<compile_context>
chip_gen: v7x
topology: tpu7x:2x2x1
jax: 0.10.0
libtpu: 0.0.40
codegen_flags: <defaults>
</compile_context>

<pallas_src>
import jax
import jax.numpy as jnp
from jax.experimental import pallas as pl
from jax.experimental.pallas import tpu as pltpu

# ---- static configuration (small, consistent with the module) --------------
B = 2
IN_CHANS = 3                  # self.in_chans  (head emits stride^2 * 3 channels)
IMG = 16
PATCH = 4                     # self.patch_size
STRIDE = 4                    # self.stride  (== PATCH -> loss fusion is exact)
EMBED = 32                    # synthetic encoder embed dim
DEC_CH = 16                   # self.decoder.out_channels
HP = IMG // PATCH             # patches per side
TOKENS = B * HP * HP          # 32
PATCH_DIM = IN_CHANS * PATCH * PATCH     # 48  (patchified pixel channels)
OUT_CH = STRIDE * STRIDE * IN_CHANS      # 48  (1x1 conv output channels)
LANE = 128                    # lane-dense padded channel width


# ---- single fused Pallas kernel ---------------------------------------------
def _fused_kernel(p_ref, m_ref, wpe, bpe, mtok, wenc, benc, wdo, bdo, loss_ref):
    p = p_ref[...]            # (TOKENS, LANE) f32, zero past column PATCH_DIM
    # Per-token mask (TOKENS, 1): broadcast ONCE across lanes in-kernel (XLU
    # slot is otherwise idle here), reuse for both the blend and the loss.
    mb = jnp.broadcast_to(m_ref[...], (TOKENS, LANE))

    # Patch embedding: Conv2d(kernel=stride=patch_size) expressed as a matmul.
    # bf16 operands, f32 MXU accumulation (safe on v5e/v6e/v7x MXUs).
    emb = jnp.dot(p.astype(jnp.bfloat16), wpe[...],
                  preferred_element_type=jnp.float32) + bpe[...]

    # SimMIM mask-token substitution:  emb*(1-m) + mtok*m  ==  emb + m*(mtok-emb)
    # (bpe / mtok / benc / bdo are pre-replicated to (TOKENS, LANE): pure VPU).
    emb = emb + mb * (mtok[...] - emb)

    # TODO(synk): the real Swin/nmODE encoder and U-Net decoder are injected
    # submodules not defined in the spec; one residual MLP block plus the
    # folded linear below stand in for them.  (tanh-GELU kept deliberately:
    # EUP-friendly; PyTorch nn.GELU default is exact erf.)
    h = jax.nn.gelu(jnp.dot(emb.astype(jnp.bfloat16), wenc[...],
                            preferred_element_type=jnp.float32) + benc[...],
                    approximate=True) + emb

    # Folded (decoder projection) @ (self.out[0] 1x1 Conv2d):
    #   wdo = wdec @ wout,  bdo = bdec @ wout + bout   (precomputed, padded)
    o = jnp.dot(h.astype(jnp.bfloat16), wdo[...],
                preferred_element_type=jnp.float32) + bdo[...]

    # Masked L1 loss, fused.  STRIDE == PATCH, so PixelShuffle is a within-patch
    # permutation matching the patchify flatten order, and the mask is constant
    # per patch.  Explicit lane-validity mask makes this robust even if padded
    # lanes of o / biases ever become nonzero.
    lane = jax.lax.broadcasted_iota(jnp.int32, (TOKENS, LANE), 1)
    valid = (lane < PATCH_DIM).astype(jnp.float32)
    num = jnp.sum(jnp.abs(p - o) * valid * mb)
    # Pixel-level mask sum == sum(per-token mask) * PATCH*PATCH (channel dim of
    # the repeated mask is singleton in the reference, so no IN_CHANS factor).
    den = jnp.sum(m_ref[...]) * float(PATCH * PATCH)
    # Single divide (was: two serial divides sitting after the full reduction).
    loss_ref[0, 0] = num / ((den + 1e-5) * float(IN_CHANS))


# ---- parameter packing (done ONCE, outside the per-call forward) -------------
def _pad2(w, rows, cols, dtype):
    out = jnp.zeros((rows, cols), dtype)
    return out.at[: w.shape[0], : w.shape[1]].set(w.astype(dtype))


def _pad_bcast(b, cols, dtype):
    """Zero-pad a (1, C) row to `cols` lanes and replicate to TOKENS sublanes
    so in-kernel adds are full (8,128)-aligned tiles (no sublane broadcast)."""
    row = jnp.zeros((1, cols), dtype).at[:, : b.shape[1]].set(b.astype(dtype))
    return jnp.broadcast_to(row, (TOKENS, cols)) * jnp.ones((TOKENS, cols), dtype)


def pack_params(params):
    """Fold decoder-proj + 1x1-conv head, zero-pad channel dims to 128, and
    pre-replicate row vectors across TOKENS sublanes (one-time cost)."""
    wdo = params["wdec"] @ params["wout"]                    # (EMBED, OUT_CH)
    bdo = params["bdec"] @ params["wout"] + params["bout"]   # (1, OUT_CH)
    return dict(
        wpe=_pad2(params["wpe"], LANE, LANE, jnp.bfloat16),
        bpe=_pad_bcast(params["bpe"], LANE, jnp.float32),
        mtok=_pad_bcast(params["mtok"], LANE, jnp.float32),
        wenc=_pad2(params["wenc"], LANE, LANE, jnp.bfloat16),
        benc=_pad_bcast(params["benc"], LANE, jnp.float32),
        wdo=_pad2(wdo, LANE, LANE, jnp.bfloat16),
        bdo=_pad_bcast(bdo, LANE, jnp.float32),
    )


# ---- wrapper -------------------------------------------------------------------
@jax.jit
def swin_unet_nmode_forward(x, mask, packed):
    """x: (B, IN_CHANS, IMG, IMG) f32 NCHW ; mask: (B, HP, HP) in {0,1}."""
    # Patchify NCHW -> (TOKENS, C*ps*ps).  Flatten order (C, ph, pw) is exactly
    # the order PixelShuffle(stride) writes the 1x1-conv channels back to pixels
    # (STRIDE == PATCH), so the reconstruction never needs to leave token layout.
    # This is the one remaining wrapper copy-fusion (see header note / TODO).
    p = x.reshape(B, IN_CHANS, HP, PATCH, HP, PATCH)
    p = p.transpose(0, 2, 4, 1, 3, 5).reshape(TOKENS, PATCH_DIM)
    p = jnp.pad(p, ((0, 0), (0, LANE - PATCH_DIM)))          # lane-dense, zeros

    # Per-token mask stays (TOKENS, 1): reshape is a free bitcast, the lane
    # broadcast happens inside the kernel.
    m = mask.reshape(TOKENS, 1).astype(jnp.float32)

    flops = 2 * TOKENS * LANE * LANE * 3                     # 3 matmuls
    bytes_accessed = (p.size + m.size) * 4 + sum(
        int(v.size) * v.dtype.itemsize for v in packed.values()) + 4

    loss = pl.pallas_call(
        _fused_kernel,
        out_shape=jax.ShapeDtypeStruct((1, 1), jnp.float32),
        in_specs=[pl.BlockSpec(memory_space=pltpu.MemorySpace.VMEM)] * 9,
        out_specs=pl.BlockSpec(memory_space=pltpu.MemorySpace.SMEM),
        cost_estimate=pl.CostEstimate(
            flops=flops,
            transcendentals=TOKENS * LANE,                   # gelu
            bytes_accessed=bytes_accessed,
        ),
        # Grid-less: ~0.15 MiB resident, fits every generation's scoped VMEM.
        # When scaling up: add a parallel token-block grid axis + explicit
        # pltpu.CompilerParams(vmem_limit_bytes=...) sized for v7x's 64 MiB.
    )(p, m, packed["wpe"], packed["bpe"], packed["mtok"],
      packed["wenc"], packed["benc"], packed["wdo"], packed["bdo"])
    return loss[0, 0]


def init_params(key):
    ks = jax.random.split(key, 5)

    def w(k, shape, scale=0.02):
        return jax.random.normal(k, shape, jnp.float32) * scale

    return dict(
        wpe=w(ks[0], (PATCH_DIM, EMBED)),
        bpe=jnp.zeros((1, EMBED), jnp.float32),
        mtok=w(ks[1], (1, EMBED)),
        wenc=w(ks[2], (EMBED, EMBED)),
        benc=jnp.zeros((1, EMBED), jnp.float32),
        wdec=w(ks[3], (EMBED, DEC_CH)),
        bdec=jnp.zeros((1, DEC_CH), jnp.float32),
        wout=w(ks[4], (DEC_CH, OUT_CH)),
        bout=jnp.zeros((1, OUT_CH), jnp.float32),
    )


if __name__ == "__main__":
    key = jax.random.PRNGKey(0)
    kx, km, kp = jax.random.split(key, 3)

    x = jax.random.normal(kx, (B, IN_CHANS, IMG, IMG), jnp.float32)
    mask = (jax.random.uniform(km, (B, HP, HP)) > 0.5).astype(jnp.float32)

    params = init_params(kp)
    packed = pack_params(params)        # fold + pad + replicate once, offline

    loss = swin_unet_nmode_forward(x, mask, packed)
    jax.block_until_ready(loss)
    assert jnp.isfinite(loss)
    print("KERNEL_OK")
</pallas_src>

<mosaic_0001>
module attributes {stable_mosaic.version = 11 : i64} {
  func.func @_fused_kernel(%arg0: memref<32x128xf32, #tpu.memory_space<vmem>>, %arg1: memref<32x1xf32, #tpu.memory_space<vmem>>, %arg2: memref<128x128xbf16, #tpu.memory_space<vmem>>, %arg3: memref<32x128xf32, #tpu.memory_space<vmem>>, %arg4: memref<32x128xf32, #tpu.memory_space<vmem>>, %arg5: memref<128x128xbf16, #tpu.memory_space<vmem>>, %arg6: memref<32x128xf32, #tpu.memory_space<vmem>>, %arg7: memref<128x128xbf16, #tpu.memory_space<vmem>>, %arg8: memref<32x128xf32, #tpu.memory_space<vmem>>, %arg9: memref<1x1xf32, #tpu.memory_space<smem>>) attributes {dimension_semantics = [], scalar_prefetch = 0 : i64, scratch_operands = 0 : i64, tpu.core_type = #tpu.core_type<tc>} {
    %c0 = arith.constant 0 : index
    %c0_0 = arith.constant 0 : index
    %0 = vector.load %arg0[%c0, %c0_0] : memref<32x128xf32, #tpu.memory_space<vmem>>, vector<32x128xf32>
    %c0_1 = arith.constant 0 : index
    %c0_2 = arith.constant 0 : index
    %1 = vector.load %arg1[%c0_1, %c0_2] : memref<32x1xf32, #tpu.memory_space<vmem>>, vector<32x1xf32>
    %2 = vector.shape_cast %1 : vector<32x1xf32> to vector<32x1xf32>
    %3 = vector.broadcast %2 : vector<32x1xf32> to vector<32x128xf32>
    %4 = arith.truncf %0 : vector<32x128xf32> to vector<32x128xbf16>
    %c0_3 = arith.constant 0 : index
    %c0_4 = arith.constant 0 : index
    %5 = vector.load %arg2[%c0_3, %c0_4] : memref<128x128xbf16, #tpu.memory_space<vmem>>, vector<128x128xbf16>
    %cst = arith.constant dense<0.000000e+00> : vector<32x128xf32>
    %6 = tpu.matmul %4, %5, %cst {dimension_numbers = #tpu.dot_dimension_numbers<[1], [0], [0], [1], [0, 0, 1, 1], [], []>} : vector<32x128xbf16>, vector<128x128xbf16>, vector<32x128xf32> -> vector<32x128xf32>
    %c0_5 = arith.constant 0 : index
    %c0_6 = arith.constant 0 : index
    %7 = vector.load %arg3[%c0_5, %c0_6] : memref<32x128xf32, #tpu.memory_space<vmem>>, vector<32x128xf32>
    %8 = arith.addf %6, %7 : vector<32x128xf32>
    %c0_7 = arith.constant 0 : index
    %c0_8 = arith.constant 0 : index
    %9 = vector.load %arg4[%c0_7, %c0_8] : memref<32x128xf32, #tpu.memory_space<vmem>>, vector<32x128xf32>
    %10 = arith.subf %9, %8 : vector<32x128xf32>
    %11 = arith.mulf %3, %10 : vector<32x128xf32>
    %12 = arith.addf %8, %11 : vector<32x128xf32>
    %13 = arith.truncf %12 : vector<32x128xf32> to vector<32x128xbf16>
    %c0_9 = arith.constant 0 : index
    %c0_10 = arith.constant 0 : index
    %14 = vector.load %arg5[%c0_9, %c0_10] : memref<128x128xbf16, #tpu.memory_space<vmem>>, vector<128x128xbf16>
    %cst_11 = arith.constant dense<0.000000e+00> : vector<32x128xf32>
    %15 = tpu.matmul %13, %14, %cst_11 {dimension_numbers = #tpu.dot_dimension_numbers<[1], [0], [0], [1], [0, 0, 1, 1], [], []>} : vector<32x128xbf16>, vector<128x128xbf16>, vector<32x128xf32> -> vector<32x128xf32>
    %c0_12 = arith.constant 0 : index
    %c0_13 = arith.constant 0 : index
    %16 = vector.load %arg6[%c0_12, %c0_13] : memref<32x128xf32, #tpu.memory_space<vmem>>, vector<32x128xf32>
    %17 = arith.addf %15, %16 : vector<32x128xf32>
    %18 = arith.mulf %17, %17 : vector<32x128xf32>
    %19 = arith.mulf %17, %18 : vector<32x128xf32>
    %cst_14 = arith.constant 4.471500e-02 : f32
    %20 = vector.broadcast %cst_14 : f32 to vector<32x128xf32>
    %21 = arith.mulf %20, %19 : vector<32x128xf32>
    %22 = arith.addf %17, %21 : vector<32x128xf32>
    %cst_15 = arith.constant 0.797884583 : f32
    %23 = vector.broadcast %cst_15 : f32 to vector<32x128xf32>
    %24 = arith.mulf %23, %22 : vector<32x128xf32>
    %25 = math.tanh %24 : vector<32x128xf32>
    %cst_16 = arith.constant 1.000000e+00 : f32
    %26 = vector.broadcast %cst_16 : f32 to vector<32x128xf32>
    %27 = arith.addf %26, %25 : vector<32x128xf32>
    %cst_17 = arith.constant 5.000000e-01 : f32
    %28 = vector.broadcast %cst_17 : f32 to vector<32x128xf32>
    %29 = arith.mulf %28, %27 : vector<32x128xf32>
    %30 = arith.mulf %17, %29 : vector<32x128xf32>
    %31 = arith.addf %30, %12 : vector<32x128xf32>
    %32 = arith.truncf %31 : vector<32x128xf32> to vector<32x128xbf16>
    %c0_18 = arith.constant 0 : index
    %c0_19 = arith.constant 0 : index
    %33 = vector.load %arg7[%c0_18, %c0_19] : memref<128x128xbf16, #tpu.memory_space<vmem>>, vector<128x128xbf16>
    %cst_20 = arith.constant dense<0.000000e+00> : vector<32x128xf32>
    %34 = tpu.matmul %32, %33, %cst_20 {dimension_numbers = #tpu.dot_dimension_numbers<[1], [0], [0], [1], [0, 0, 1, 1], [], []>} : vector<32x128xbf16>, vector<128x128xbf16>, vector<32x128xf32> -> vector<32x128xf32>
    %c0_21 = arith.constant 0 : index
    %c0_22 = arith.constant 0 : index
    %35 = vector.load %arg8[%c0_21, %c0_22] : memref<32x128xf32, #tpu.memory_space<vmem>>, vector<32x128xf32>
    %36 = arith.addf %34, %35 : vector<32x128xf32>
    %37 = tpu.iota {dimensions = array<i32: 1>} : vector<32x128xi32>
    %c48_i32 = arith.constant 48 : i32
    %38 = vector.broadcast %c48_i32 : i32 to vector<32x128xi32>
    %39 = arith.cmpi slt, %37, %38 : vector<32x128xi32>
    %40 = arith.extui %39 : vector<32x128xi1> to vector<32x128xi32>
    %41 = arith.sitofp %40 : vector<32x128xi32> to vector<32x128xf32>
    %42 = arith.subf %0, %36 : vector<32x128xf32>
    %43 = math.absf %42 : vector<32x128xf32>
    %44 = arith.mulf %43, %41 : vector<32x128xf32>
    %45 = arith.mulf %44, %3 : vector<32x128xf32>
    %46 = vector.shape_cast %45 : vector<32x128xf32> to vector<1x32x128xf32>
    %cst_23 = arith.constant dense<0.000000e+00> : vector<1xf32>
    %47 = vector.multi_reduction <add>, %46, %cst_23 [1, 2] : vector<1x32x128xf32> to vector<1xf32>
    %48 = vector.shape_cast %47 : vector<1xf32> to vector<1x1x1xf32>
    %49 = vector.extract %48[0, 0, 0] : f32 from vector<1x1x1xf32>
    %c0_24 = arith.constant 0 : index
    %c0_25 = arith.constant 0 : index
    %50 = vector.load %arg1[%c0_24, %c0_25] : memref<32x1xf32, #tpu.memory_space<vmem>>, vector<32x1xf32>
    %51 = vector.shape_cast %50 : vector<32x1xf32> to vector<1x32x1xf32>
    %cst_26 = arith.constant dense<0.000000e+00> : vector<1xf32>
    %52 = vector.multi_reduction <add>, %51, %cst_26 [1, 2] : vector<1x32x1xf32> to vector<1xf32>
    %53 = vector.shape_cast %52 : vector<1xf32> to vector<1x1x1xf32>
    %54 = vector.extract %53[0, 0, 0] : f32 from vector<1x1x1xf32>
    %cst_27 = arith.constant 1.600000e+01 : f32
    %55 = arith.mulf %54, %cst_27 : f32
    %cst_28 = arith.constant 9.99999974E-6 : f32
    %56 = arith.addf %55, %cst_28 : f32
    %cst_29 = arith.constant 3.000000e+00 : f32
    %57 = arith.mulf %56, %cst_29 : f32
    %58 = arith.divf %49, %57 : f32
    %c0_30 = arith.constant 0 : index
    %c0_31 = arith.constant 0 : index
    %59 = memref.load %arg9[%c0_30, %c0_31] : memref<1x1xf32, #tpu.memory_space<smem>>
    memref.store %58, %arg9[%c0_30, %c0_31] : memref<1x1xf32, #tpu.memory_space<smem>>
    return
  }
}

</mosaic_0001>

<bundles_post_ra>
// kernel: swin_unet_nmode_forward.1
= control target key start
LH: loop header
LB: loop body
LE: loop exit
PB: predicated region body
PF: predicated region fallthrough
CT: control target
= control target key end

     0   :  { %v719_v2 = vmov 0   ;;  %vm508_vm0 = vcmask 7168   ;;  %s991_s0 = inlined_call_operand.vmem [shape: f32[32,128], index: 0, kind: input, shape index: {}]   ;;  %s992_s1 = inlined_call_operand.vmem [shape: f32[32,1], index: 1, kind: input, shape index: {}]   ;;  %s993_s2 = inlined_call_operand.vmem [shape: bf16[128,128], index: 2, kind: input, shape index: {}]   ;;  %s994_s3 = inlined_call_operand.vmem [shape: f32[32,128], index: 3, kind: input, shape index: {}]   ;;  %s995_s4 = inlined_call_operand.vmem [shape: f32[32,128], index: 4, kind: input, shape index: {}]   ;;  %s996_s5 = inlined_call_operand.vmem [shape: bf16[128,128], index: 5, kind: input, shape index: {}]   ;;  %s997_s6 = inlined_call_operand.vmem [shape: f32[32,128], index: 6, kind: input, shape index: {}]   ;;  %s998_s7 = inlined_call_operand.vmem [shape: bf16[128,128], index: 7, kind: input, shape index: {}]   ;;  %s999_s8 = inlined_call_operand.vmem [shape: f32[32,128], index: 8, kind: input, shape index: {}]   ;;  %s1000_s9 = inlined_call_operand.hbm [shape: f32[1,1], index: 9, kind: output, shape index: {}]  }
   0x1   :  { %v673_v0 = vld [vmem:[%s993_s2] sm:$0xff]   ;;  %v674_v1 = vld [vmem:[%s993_s2 + $0x8] sm:$0xff]   ;;  %671 = vset.pattern.permute.xlu0 %v719_v2  ;;  %672 = vset.pattern.permute.xlu1 %v719_v2  ;;  %v675_v3 = vld [vmem:[%s993_s2 + $0x10] sm:$0xff]  }
   0x2   :  { %602 = vmatprep.subr.bf16.mxu0 %v673_v0  ;;  %v676_v4 = vld [vmem:[%s993_s2 + $0x18] sm:$0xff]   ;;  %v787_v5 = vld [vmem:[%s991_s0] sm:$0xff]  ;;  %v792_v6 = vld [vmem:[%s991_s0 + $0x8] sm:$0xff] }
   0x3   :  { %603 = vmatpush3.bf16.msra.mxu0 %v673_v0  ;;  %v62_v7 = vpack.c.bf16 %v792_v6, %v787_v5  ;;  %v38_v8 = vld [vmem:[%s992_s1] sm:$0xff]  ;;  %v802_v9 = vld [vmem:[%s992_s1 + $0x10] sm:$0xff]  ;;  %v39_v12 = vld [vmem:[%s992_s1 + $0x8] sm:$0xff] }
   0x4   :  { %604 = vmatprep.subr.bf16.mxu0 %v674_v1  ;;  %v677_v10 = vld [vmem:[%s993_s2 + $0x20] sm:$0xff]   ;;  %44 = vperm.xlu0 %671, %v38_v8   ;;  %v509_v11 = vsel %vm508_vm0, %v38_v8, 0.0  ;;  %v815_v13 = vld [vmem:[%s992_s1 + $0x18] sm:$0xff]  ;;  %v510_v14 = vsel %vm508_vm0, %v39_v12, 0.0  ;;  %v682_v17 = vld [vmem:[%s996_s5 + $0x8] sm:$0xff]  }
   0x5   :  { %54 = vperm.xlu1 %672, %v802_v9   ;;  %618 = vmatprep.mubr.bf16.mxu0 %v62_v7  ;;  %v681_v15 = vld [vmem:[%s996_s5] sm:$0xff]   ;;  %v821_v16 = vadd.f32 %v510_v14, %v509_v11  ;;  %v678_v18 = vld [vmem:[%s993_s2 + $0x28] sm:$0xff]   ;;  %v683_v19 = vld [vmem:[%s996_s5 + $0x10] sm:$0xff]  }
   0x6   :  { %622 = vmatprep.subr.bf16.mxu1 %v681_v15  ;;  %v679_v20 = vld [vmem:[%s993_s2 + $0x30] sm:$0xff]   ;;  %v684_v21 = vld [vmem:[%s996_s5 + $0x18] sm:$0xff]  }
   0x7   :  { %605 = vmatpush3.bf16.msra.mxu0 %v674_v1  ;;  %623 = vmatpush3.bf16.msra.mxu1 %v681_v15 }
   0x8   :  { %606 = vmatprep.subr.bf16.mxu0 %v675_v3  ;;  %49 = vperm.xlu0 %671, %v39_v12  }
   0x9   :  { %59 = vperm.xlu1 %672, %v815_v13   ;;  %624 = vmatprep.subr.bf16.mxu1 %v682_v17 }
   0xb   :  { %607 = vmatpush3.bf16.msra.mxu0 %v675_v3  ;;  %625 = vmatpush3.bf16.msra.mxu1 %v682_v17 }
   0xc   :  { %608 = vmatprep.subr.bf16.mxu0 %v676_v4  ;;  %626 = vmatprep.subr.bf16.mxu1 %v683_v19 }
   0xf   :  { %609 = vmatpush3.bf16.msra.mxu0 %v676_v4  ;;  %627 = vmatpush3.bf16.msra.mxu1 %v683_v19 }
  0x10   :  { %610 = vmatprep.subr.bf16.mxu0 %v677_v10 }
  0x13   :  { %611 = vmatpush3.bf16.msra.mxu0 %v677_v10 }
  0x14   :  { %612 = vmatprep.subr.bf16.mxu0 %v678_v18 }
  0x17   :  { %613 = vmatpush3.bf16.msra.mxu0 %v678_v18 }
  0x18   :  { %14 = vsyncpa [#allocation3], 0  ;;  %614 = vmatprep.subr.bf16.mxu0 %v679_v20  ;;  %v680_v22 = vld [vmem:[%s993_s2 + $0x38] sm:$0xff]   ;;  %628 = vmatprep.subr.bf16.mxu1 %v684_v21  ;;  %v685_v23 = vld [vmem:[%s996_s5 + $0x20] sm:$0xff]   ;;  %s707_s12 = scalar_lea.hbm %s1000_s9, 16 }
  0x19   :  { %v848_v24 = vld [vmem:[%s991_s0 + $0x10] sm:$0xff]  ;;  %v853_v25 = vld [vmem:[%s991_s0 + $0x18] sm:$0xff]  ;;  %629 = vmatpush3.bf16.msra.mxu1 %v684_v21  ;;  %v686_v27 = vld [vmem:[%s996_s5 + $0x28] sm:$0xff]   ;;  %p708_p0 = scmp.ne.s32.totalorder %s1000_s9, %s707_s12  ;;  %p711_p1 = scmp.lt.u32.totalorder %s707_s12, %s1000_s9 }
  0x1a   :  { %630 = vmatprep.subr.bf16.mxu1 %v685_v23  ;;  %v63_v26 = vpack.c.bf16 %v853_v25, %v848_v24  ;;  %v687_v28 = vld [vmem:[%s996_s5 + $0x30] sm:$0xff]   ;;  %v688_v29 = vld [vmem:[%s996_s5 + $0x38] sm:$0xff]   ;;  %v80_v31 = vld [vmem:[%s994_s3] sm:$0xff] }
  0x1b   :  { %615 = vmatpush3.bf16.msra.mxu0 %v679_v20  ;;  %v82_v30 = vld [vmem:[%s994_s3 + $0x10] sm:$0xff]  ;;  %v83_v35 = vld [vmem:[%s994_s3 + $0x18] sm:$0xff]  ;;  %v181_v39 = vld [vmem:[%s995_s4] sm:$0xff]  ;;  %p713_p2 = pnand %p711_p1, %p708_p0 }
  0x1c   :  { %616 = vmatprep.subr.bf16.mxu0 %v680_v22  ;;  %v183_v34 = vld [vmem:[%s995_s4 + $0x10] sm:$0xff]  ;;  %v81_v40 = vld [vmem:[%s994_s3 + $0x8] sm:$0xff]  ;;  %v184_v43 = vld [vmem:[%s995_s4 + $0x18] sm:$0xff] }
  0x1d   :  { %631 = vmatpush3.bf16.msra.mxu1 %v685_v23  ;;  %v182_v47 = vld [vmem:[%s995_s4 + $0x8] sm:$0xff]  ;;  %v689_v0 = vld [vmem:[%s998_s7] sm:$0xff]   ;;  %v691_v2 = vld [vmem:[%s998_s7 + $0x10] sm:$0xff]  }
  0x1e   :  { %632 = vmatprep.subr.bf16.mxu1 %v686_v27  ;;  %v690_v1 = vld [vmem:[%s998_s7 + $0x8] sm:$0xff]   ;;  %v692_v3 = vld [vmem:[%s998_s7 + $0x18] sm:$0xff]   ;;  %v693_v4 = vld [vmem:[%s998_s7 + $0x20] sm:$0xff]  }
  0x1f   :  { %617 = vmatpush3.bf16.msra.mxu0 %v680_v22  ;;  %v694_v7 = vld [vmem:[%s998_s7 + $0x28] sm:$0xff]   ;;  %v695_v8 = vld [vmem:[%s998_s7 + $0x30] sm:$0xff]   ;;  %v696_v10 = vld [vmem:[%s998_s7 + $0x38] sm:$0xff]  }
  0x20   :  { %642 = vmatprep.subr.bf16.mxu0 %v689_v0  ;;  %v217_v11 = vld [vmem:[%s997_s6 + $0x10] sm:$0xff]  ;;  %v215_v12 = vld [vmem:[%s997_s6] sm:$0xff]  ;;  %v218_v15 = vld [vmem:[%s997_s6 + $0x18] sm:$0xff] }
  0x21   :  { %633 = vmatpush3.bf16.msra.mxu1 %v686_v27  ;;  %v216_v19 = vld [vmem:[%s997_s6 + $0x8] sm:$0xff] }
  0x22   :  { %619 = vmatmul.mubr.bf16.vlgmr.msra.gmra.mrb[0].mxu0 %v63_v26  ;;  %634 = vmatprep.subr.bf16.mxu1 %v687_v28 }
  0x23   :  { %643 = vmatpush3.bf16.msra.mxu0 %v689_v0 }
  0x24   :  { %644 = vmatprep.subr.bf16.mxu0 %v690_v1 }
  0x25   :  { %635 = vmatpush3.bf16.msra.mxu1 %v687_v28 }
  0x26   :  { %636 = vmatprep.subr.bf16.mxu1 %v688_v29 }
  0x27   :  { %645 = vmatpush3.bf16.msra.mxu0 %v690_v1 }
  0x28   :  { %646 = vmatprep.subr.bf16.mxu0 %v691_v2 }
  0x29   :  { %637 = vmatpush3.bf16.msra.mxu1 %v688_v29 }
  0x2b   :  { %647 = vmatpush3.bf16.msra.mxu0 %v691_v2 }
  0x2c   :  { %648 = vmatprep.subr.bf16.mxu0 %v692_v3 }
  0x2f   :  { %649 = vmatpush3.bf16.msra.mxu0 %v692_v3 }
  0x30   :  { %650 = vmatprep.subr.bf16.mxu0 %v693_v4 }
  0x33   :  { %651 = vmatpush3.bf16.msra.mxu0 %v693_v4 }
  0x34   :  { %652 = vmatprep.subr.bf16.mxu0 %v694_v7 }
  0x37   :  { %653 = vmatpush3.bf16.msra.mxu0 %v694_v7 }
  0x38   :  { %654 = vmatprep.subr.bf16.mxu0 %v695_v8 }
  0x3b   :  { %655 = vmatpush3.bf16.msra.mxu0 %v695_v8 }
  0x3c   :  { %656 = vmatprep.subr.bf16.mxu0 %v696_v10 }
  0x3f   :  { %657 = vmatpush3.bf16.msra.mxu0 %v696_v10 }
  0x83   :  { %v880_v36 = vpop.permute.xlu0 %44 }
  0x84   :  { %v872_v32 = vpop.permute.xlu1 %54 }
  0x87   :  { %v898_v55 = vpop.permute.xlu0 %49 }
  0x88   :  { %v894_v52 = vpop.permute.xlu1 %59 }
  0xf5   :  { %v620_v33 = vpop.f32.mrb[0].mxu0 }
  0xf6   :  { %v175_v37 = vadd.f32 %v620_v33, %v82_v30  ;;  %v166_v38 = vpop.f32.mrb[1].mxu0 }
  0xf7   :  { %v167_v41 = vadd.f32 %v166_v38, %v80_v31  ;;  %v621_v42 = vpop.f32.mrb[2].mxu0 }
  0xf8   :  { %v187_v44 = vsub.f32 %v183_v34, %v175_v37  ;;  %v178_v45 = vadd.f32 %v621_v42, %v83_v35  ;;  %v169_v46 = vpop.f32.mrb[3].mxu0 }
  0xf9   :  { %v185_v48 = vsub.f32 %v181_v39, %v167_v41  ;;  %v170_v49 = vadd.f32 %v169_v46, %v81_v40 }
  0xfa   :  { %v188_v50 = vsub.f32 %v184_v43, %v178_v45  ;;  %v191_v54 = vmul.f32 %v187_v44, %v872_v32 }
  0xfb   :  { %v186_v51 = vsub.f32 %v182_v47, %v170_v49  ;;  %v189_v53 = vmul.f32 %v185_v48, %v880_v36 }
  0xfc   :  { %v192_v56 = vmul.f32 %v188_v50, %v894_v52  ;;  %v908_v61 = vadd.f32 %v191_v54, %v175_v37 }
  0xfd   :  { %v190_v57 = vmul.f32 %v186_v51, %v898_v55  ;;  %v904_v59 = vadd.f32 %v189_v53, %v167_v41 }
  0xfe   :  { %v902_v58 = vadd.f32 %v192_v56, %v178_v45 }
  0xff   :  { %v906_v60 = vadd.f32 %v190_v57, %v170_v49 }
 0x100   :  { %v198_v63 = vpack.c.bf16 %v902_v58, %v908_v61 }
 0x101   :  { %v197_v62 = vpack.c.bf16 %v906_v60, %v904_v59 }
 0x103   :  { %638 = vmatprep.mubr.bf16.mxu1 %v197_v62 }
 0x104   :  { %639 = vmatmul.mubr.bf16.vlgmr.msra.gmra.mrb[0].mxu1 %v198_v63 }
 0x1d7   :  { %v640_v14 = vpop.f32.mrb[0].mxu1 }
 0x1d8   :  { %v310_v17 = vadd.f32 %v640_v14, %v217_v11  ;;  %v301_v18 = vpop.f32.mrb[1].mxu1 }
 0x1d9   :  { %v302_v20 = vadd.f32 %v301_v18, %v215_v12  ;;  %v641_v21 = vpop.f32.mrb[2].mxu1 }
 0x1da   :  { %v318_v22 = vmul.f32 %v310_v17, %v310_v17  ;;  %v313_v23 = vadd.f32 %v641_v21, %v218_v15  ;;  %v304_v26 = vpop.f32.mrb[3].mxu1 }
 0x1db   :  { %v316_v27 = vmul.f32 %v302_v20, %v302_v20  ;;  %v305_v28 = vadd.f32 %v304_v26, %v216_v19 }
 0x1dc   :  { %v322_v29 = vmul.f32 %v318_v22, %v310_v17  ;;  %v319_v30 = vmul.f32 %v313_v23, %v313_v23 }
 0x1dd   :  { %v320_v31 = vmul.f32 %v316_v27, %v302_v20  ;;  %v317_v33 = vmul.f32 %v305_v28, %v305_v28 }
 0x1de   :  { %v326_v34 = vmul.f32 0.044715, %v322_v29  ;;  %v323_v35 = vmul.f32 %v319_v30, %v313_v23 }
 0x1df   :  { %v324_v37 = vmul.f32 0.044715, %v320_v31  ;;  %v321_v38 = vmul.f32 %v317_v33, %v305_v28 }
 0x1e0   :  { %v330_v39 = vadd.f32 %v326_v34, %v310_v17  ;;  %v327_v40 = vmul.f32 0.044715, %v323_v35  ;;  %v720_v34 = vmov 0.0  }
 0x1e1   :  { %v328_v41 = vadd.f32 %v324_v37, %v302_v20  ;;  %v325_v42 = vmul.f32 0.044715, %v321_v38 }
 0x1e2   :  { %v334_v43 = vmul.f32 0.7978846, %v330_v39  ;;  %v331_v44 = vadd.f32 %v327_v40, %v313_v23 }
 0x1e3   :  { %v332_v45 = vmul.f32 0.7978846, %v328_v41  ;;  %v329_v46 = vadd.f32 %v325_v42, %v305_v28 }
 0x1e4   :  { %697 = vtanh.f32 %v334_v43  ;;  %v335_v47 = vmul.f32 0.7978846, %v331_v44 }
 0x1e5   :  { %699 = vtanh.f32 %v332_v45  ;;  %v333_v48 = vmul.f32 0.7978846, %v329_v46 }
 0x1e6   :  { %701 = vtanh.f32 %v335_v47 }
 0x1e7   :  { %703 = vtanh.f32 %v333_v48 }
 0x1ee   :  { %v698_v49 = vpop.eup %697 }
 0x1ef   :  { %v700_v50 = vpop.eup %699  ;;  %v342_v51 = vadd.f32 1.0, %v698_v49 }
 0x1f0   :  { %v702_v53 = vpop.eup %701  ;;  %v340_v54 = vadd.f32 1.0, %v700_v50 }
 0x1f1   :  { %v704_v56 = vpop.eup %703  ;;  %v346_v57 = vmul.f32 0.5, %v342_v51  ;;  %v343_v62 = vadd.f32 1.0, %v702_v53 }
 0x1f2   :  { %v341_v63 = vadd.f32 1.0, %v704_v56  ;;  %v344_v0 = vmul.f32 0.5, %v340_v54 }
 0x1f3   :  { %v350_v1 = vmul.f32 %v346_v57, %v310_v17  ;;  %v347_v2 = vmul.f32 0.5, %v343_v62  ;;  %v512_v17 = vsel %vm508_vm0, %v802_v9, 0.0  ;;  %v377_v9 = vld [vmem:[%s999_s8 + $0x18] sm:$0xff] }
 0x1f4   :  { %v345_v3 = vmul.f32 0.5, %v341_v63  ;;  %v348_v4 = vmul.f32 %v344_v0, %v302_v20  ;;  %v513_v19 = vadd.f32 %v512_v17, %v821_v16  ;;  %v514_v20 = vsel %vm508_vm0, %v815_v13, 0.0  ;;  %v375_v13 = vld [vmem:[%s999_s8 + $0x8] sm:$0xff] }
 0x1f5   :  { %v351_v7 = vmul.f32 %v347_v2, %v313_v23  ;;  %v354_v10 = vadd.f32 %v350_v1, %v908_v61  ;;  %v475_v61 = vlaneseq }
 0x1f6   :  { %v349_v8 = vmul.f32 %v345_v3, %v305_v28  ;;  %v352_v12 = vadd.f32 %v348_v4, %v904_v59  ;;  %v515_v21 = vadd.f32 %v514_v20, %v513_v19 }
 0x1f7   :  { %v355_v11 = vadd.f32 %v351_v7, %v902_v58  ;;  %v376_v58 = vld [vmem:[%s999_s8 + $0x10] sm:$0xff]  ;;  %v476_v59 = vand.u32 127, %v475_v61 }
 0x1f8   :  { %v353_v14 = vadd.f32 %v349_v8, %v906_v60  ;;  %516 = vadd.xlane.f32.xlu1 %v515_v21  ;;  %v374_v60 = vld [vmem:[%s999_s8] sm:$0xff] }
 0x1f9   :  { %v357_v15 = vpack.c.bf16 %v355_v11, %v354_v10  ;;  %vm477_vm1 = vcmp.lt.s32.totalorder %v476_v59, 48 }
 0x1fa   :  { %v356_v18 = vpack.c.bf16 %v353_v14, %v352_v12  ;;  %v571_v35 = vsel %vm477_vm1, 1.0, %v720_v34 }
 0x1fc   :  { %658 = vmatprep.mubr.bf16.mxu0 %v356_v18 }
 0x1fd   :  { %659 = vmatmul.mubr.bf16.vlgmr.msra.gmra.mrb[4].mxu0 %v357_v15 }
 0x285   :  { %v517_v51 = vpop.xlane.xlu1 %516 }
 0x2d0   :  { %v660_v22 = vpop.f32.mrb[4].mxu0 }
 0x2d1   :  { %v469_v16 = vadd.f32 %v660_v22, %v376_v58  ;;  %v460_v23 = vpop.f32.mrb[5].mxu0 }
 0x2d2   :  { %v461_v26 = vadd.f32 %v460_v23, %v374_v60  ;;  %v661_v27 = vpop.f32.mrb[6].mxu0 }
 0x2d3   :  { %v482_v28 = vsub.f32 %v848_v24, %v469_v16  ;;  %v472_v29 = vadd.f32 %v661_v27, %v377_v9  ;;  %v463_v30 = vpop.f32.mrb[7].mxu0 }
 0x2d4   :  { %v480_v31 = vsub.f32 %v787_v5, %v461_v26  ;;  %v464_v33 = vadd.f32 %v463_v30, %v375_v13 }
 0x2d5   :  { %v483_v37 = vsub.f32 %v853_v25, %v472_v29  ;;  %v486_v38 = vand.u32 2147483647, %v482_v28 }
 0x2d6   :  { %v484_v39 = vand.u32 2147483647, %v480_v31  ;;  %v481_v40 = vsub.f32 %v792_v6, %v464_v33  ;;  %v518_v6 = vrot.slane %v517_v51, 4 }
 0x2d7   :  { %v487_v42 = vand.u32 2147483647, %v483_v37  ;;  %v490_v44 = vmul.f32 %v571_v35, %v486_v38 }
 0x2d8   :  { %v488_v41 = vmul.f32 %v571_v35, %v484_v39  ;;  %v485_v43 = vand.u32 2147483647, %v481_v40  ;;  %v519_v53 = vadd.f32 %v518_v6, %v517_v51 }
 0x2d9   :  { %v491_v46 = vmul.f32 %v571_v35, %v487_v42  ;;  %v494_v5 = vmul.f32 %v490_v44, %v872_v32 }
 0x2da   :  { %v489_v45 = vmul.f32 %v571_v35, %v485_v43  ;;  %v492_v24 = vmul.f32 %v488_v41, %v880_v36  ;;  %v520_v54 = vrot.slane %v519_v53, 2 }
 0x2db   :  { %v495_v49 = vmul.f32 %v491_v46, %v894_v52 }
 0x2dc   :  { %v493_v47 = vmul.f32 %v489_v45, %v898_v55  ;;  %v521_v63 = vadd.f32 %v520_v54, %v519_v53 }
 0x2de   :  { %v496_v48 = vadd.f32 %v493_v47, %v492_v24  ;;  %v522_v1 = vrot.slane %v521_v63, 1 }
 0x2e0   :  { %v497_v25 = vadd.f32 %v496_v48, %v494_v5  ;;  %v523_v32 = vadd.f32 %v522_v1, %v521_v63 }
 0x2e2   :  { %v498_v50 = vadd.f32 %v497_v25, %v495_v49 }
 0x2e4   :  { %499 = vadd.xlane.f32.xlu0 %v498_v50 }
 0x371   :  { %v500_v56 = vpop.xlane.xlu0 %499 }
 0x372   :  { %v501_v57 = vrot.slane %v500_v56, 4 }
 0x374   :  { %v502_v62 = vadd.f32 %v501_v57, %v500_v56 }
 0x376   :  { %v503_v36 = vrot.slane %v502_v62, 2 }
 0x378   :  { %v504_v0 = vadd.f32 %v503_v36, %v502_v62 }
 0x37a   :  { %v505_v55 = vrot.slane %v504_v0, 1 }
 0x37c   :  { %v506_v2 = vadd.f32 %v505_v55, %v504_v0 }
 0x37e   :  { %662 = vpush %v506_v2 }
 0x37f   :  { %664 = vpush %v523_v32 }
 0x3af   :  { %s663_s8 = spop %662 }
 0x3b0   :  { %s665_s27 = spop %664 }
 0x3b1   :  { %s525_s28 = smul.f32 16.0, %s665_s27 }
 0x3b3   :  { %s526_s2 = sadd.f32 1e-05, %s525_s28 }
 0x3b5   :  { %s527_s29 = smul.f32 3.0, %s526_s2 }
 0x3b7   :  { %v528_v52 = vstv %s527_s29 }
 0x3b8   :  { %705 = vrcp.f32 %v528_v52 }
 0x3c2   :  { %v706_v3 = vpop.eup %705 }
 0x3c3   :  { %666 = vpush %v706_v3 }
 0x3f4   :  { %s667_s30 = spop %666 }
 0x3f5   :  { %s531_s10 = smul.f32 %s667_s30, %s663_s8 }
 0x3f7   :  { %533 = sst [smem:[#allocation2]] %s531_s10 }
 0x3f8   :  { %716 = shalt.err (!%p713_p2)
}
 0x3f9   :  { %s721_s16 = smov [#allocation2]  }
 0x3fa   :  { %541 = dma.smem_to_hbm %s721_s16, 16, %s1000_s9, [#allocation3]  }
 0x3fb   :  { %717 = dma.done.wait [#allocation3], 16  }
 0x3fc   :  { %718 = vsyncadd [#allocation3], 4294967280 }
 0x3fd   :  { %545 = sfence }
 0x3fe   :  { %546 = vsyncpa [#allocation3], 1 }

</bundles_post_ra>
